<compile_context>
chip_gen: v5e
topology: v5e:2x2
jax: 0.10.0
libtpu: 0.0.40
codegen_flags: <defaults>
</compile_context>

<pallas_src>
import jax
import jax.numpy as jnp
from jax.experimental import pallas as pl
from jax.experimental.pallas import tpu as pltpu

LANE = 128       # vreg lane width
BF16_PACK = 16   # bf16 packs 16 rows per sublane group -> round batch tiles to 16


def _round_up(n, m):
    return ((n + m - 1) // m) * m


def _cdiv(a, b):
    return -(-a // b)


def value_network_kernel(x_ref, w1_ref, w2_ref, b12_ref, w3_ref, b3_ref, out_ref):
    # x_ref:   (TILE_B, S)     f32   (state dim unpadded)
    # w1_ref:  (S, H_pad)      f32   (small-K fc1 weight, zero-padded on H)
    # w2_ref:  (H_pad, H_pad)  bf16
    # b12_ref: (2, H_pad)      f32   (row 0 = b1, row 1 = b2)
    # w3_ref:  (1, H_pad)      f32
    # b3_ref:  (1,)            f32   in SMEM
    # out_ref: (TILE_B, 1)     f32

    # fc1 + ReLU: f32 matmul with K = S (tiny); padded H lanes stay exactly 0 through ReLU
    # because w1/b1 are zero-padded.
    h1 = jnp.dot(x_ref[...], w1_ref[...], preferred_element_type=jnp.float32)
    h1 = jnp.maximum(h1 + b12_ref[0:1, :], 0.0)

    # fc2 + ReLU: bf16 MXU matmul (K = H_pad, lane-aligned), f32 accumulate, f32 epilogue.
    h2 = jnp.dot(h1.astype(jnp.bfloat16), w2_ref[...],
                 preferred_element_type=jnp.float32)
    h2 = jnp.maximum(h2 + b12_ref[1:2, :], 0.0)

    # value_head: N=1 matmul as VPU multiply + lane reduction (XLU), keeps the MXU free.
    v = jnp.sum(h2 * w3_ref[...], axis=-1, keepdims=True) + b3_ref[0]   # (TILE_B, 1)
    out_ref[...] = v.astype(out_ref.dtype)


def value_network_forward(x, kp, *, max_tile_b=2048):
    """x: (B, state_dim) float32.  kp: packed kernel params (see pack_params)."""
    B, S = x.shape
    w1, w2, b12, w3, b3 = kp["w1"], kp["w2"], kp["b12"], kp["w3"], kp["b3"]

    # Packed-parameter consistency checks.
    assert w1.shape[0] == S, f"w1 in-dim {w1.shape[0]} != state_dim {S}"
    h_pad = w1.shape[1]
    assert h_pad % LANE == 0, f"h_pad {h_pad} not lane-aligned"
    assert w2.shape == (h_pad, h_pad), f"w2 {w2.shape} inconsistent with h_pad {h_pad}"
    assert b12.shape == (2, h_pad), f"b12 {b12.shape} inconsistent with h_pad {h_pad}"
    assert w3.shape == (1, h_pad), f"w3 {w3.shape} inconsistent with h_pad {h_pad}"
    assert b3.shape == (1,), f"b3 {b3.shape} must be (1,)"

    # Balanced batch tiling (rounded to 16 for bf16 sublane packing).
    num_tiles = _cdiv(B, max_tile_b)
    if num_tiles == 1 and B >= 1024:
        num_tiles = 2                       # keep both v7x TensorCores busy
    tile_b = _round_up(_cdiv(B, num_tiles), BF16_PACK)
    b_pad = num_tiles * tile_b

    xp = x.astype(jnp.float32)
    if b_pad != B:                          # pad only the batch dim (at most 15*num_tiles rows)
        xp = jnp.zeros((b_pad, S), jnp.float32).at[:B].set(xp)

    flops = 2 * b_pad * (S * h_pad + h_pad * h_pad + h_pad)
    bytes_accessed = (xp.size * 4 + w1.size * 4 + w2.size * 2
                      + b12.size * 4 + w3.size * 4 + b3.size * 4 + b_pad * 4)

    out = pl.pallas_call(
        value_network_kernel,
        out_shape=jax.ShapeDtypeStruct((b_pad, 1), jnp.float32),
        grid_spec=pltpu.PrefetchScalarGridSpec(
            num_scalar_prefetch=0,
            grid=(num_tiles,),
            in_specs=[
                # x: one batch tile per grid step, state dim unpadded (full-dim block).
                pl.BlockSpec((tile_b, S), lambda i: (i, 0)),
                # Weights/biases: constant index maps -> fetched once, VMEM-resident.
                pl.BlockSpec((S, h_pad), lambda i: (0, 0)),
                pl.BlockSpec((h_pad, h_pad), lambda i: (0, 0)),
                pl.BlockSpec((2, h_pad), lambda i: (0, 0)),
                pl.BlockSpec((1, h_pad), lambda i: (0, 0)),
                # Scalar value-head bias lives in SMEM.
                pl.BlockSpec(memory_space=pltpu.MemorySpace.SMEM),
            ],
            out_specs=pl.BlockSpec((tile_b, 1), lambda i: (i, 0)),
        ),
        compiler_params=pltpu.CompilerParams(
            dimension_semantics=("parallel",),
        ),
        cost_estimate=pl.CostEstimate(
            flops=int(flops), transcendentals=0, bytes_accessed=int(bytes_accessed)),
    )(xp, w1, w2, b12, w3, b3)

    return out[:B]


def init_params(key, state_dim, hidden_dim):
    """nn.Linear-style init (uniform +/- 1/sqrt(fan_in)); weights stored (in, out)."""
    ks = jax.random.split(key, 6)

    def linear(kw, kb, fan_in, fan_out):
        bound = 1.0 / jnp.sqrt(jnp.float32(fan_in))
        w = jax.random.uniform(kw, (fan_in, fan_out), jnp.float32, -bound, bound)
        b = jax.random.uniform(kb, (fan_out,), jnp.float32, -bound, bound)
        return w, b

    w1, b1 = linear(ks[0], ks[1], state_dim, hidden_dim)
    w2, b2 = linear(ks[2], ks[3], hidden_dim, hidden_dim)
    w3, b3 = linear(ks[4], ks[5], hidden_dim, 1)
    return {"w1": w1, "b1": b1, "w2": w2, "b2": b2, "w3": w3, "b3": b3}


def pack_params(raw, state_dim, hidden_dim):
    """Zero-pad hidden dim to lane width; w1 stays f32 with unpadded K=state_dim,
    w2 cast to bf16 for the MXU, b1/b2 stacked, b3 kept scalar."""
    h_pad = _round_up(hidden_dim, LANE)

    w1 = jnp.zeros((state_dim, h_pad), jnp.float32).at[:, :hidden_dim].set(raw["w1"])
    w2 = jnp.zeros((h_pad, h_pad), jnp.float32).at[:hidden_dim, :hidden_dim].set(raw["w2"])
    b12 = jnp.zeros((2, h_pad), jnp.float32)
    b12 = b12.at[0, :hidden_dim].set(raw["b1"])
    b12 = b12.at[1, :hidden_dim].set(raw["b2"])
    w3 = jnp.zeros((1, h_pad), jnp.float32).at[0, :hidden_dim].set(raw["w3"][:, 0])
    b3 = raw["b3"].astype(jnp.float32).reshape((1,))

    return {
        "w1": w1,                      # f32 (state_dim, h_pad)
        "w2": w2.astype(jnp.bfloat16),  # bf16 (h_pad, h_pad)
        "b12": b12,
        "w3": w3,
        "b3": b3,
    }


def reference_forward(x, raw):
    """Pure-JAX reference mimicking the kernel's dtype pipeline
    (fc1 in f32, fc2 with bf16 operands + f32 accumulate, f32 head)."""
    h1 = jnp.maximum(
        jnp.dot(x, raw["w1"], precision=jax.lax.Precision.HIGHEST) + raw["b1"], 0.0)
    w2 = raw["w2"].astype(jnp.bfloat16)
    h2 = jnp.maximum(
        jnp.dot(h1.astype(jnp.bfloat16), w2, preferred_element_type=jnp.float32)
        + raw["b2"], 0.0)
    return jnp.sum(h2 * raw["w3"][:, 0], axis=-1, keepdims=True) + raw["b3"]


if __name__ == "__main__":
    key = jax.random.PRNGKey(0)
    k_param, k_x1, k_x2 = jax.random.split(key, 3)

    batch = 8
    state_dim = 8
    hidden_dim = 32

    raw = init_params(k_param, state_dim, hidden_dim)
    kparams = pack_params(raw, state_dim, hidden_dim)

    # Case 1: tiny batch, single tile (with batch rounded up to 16 inside the wrapper).
    x1 = jax.random.normal(k_x1, (batch, state_dim), jnp.float32)
    out1 = jax.block_until_ready(value_network_forward(x1, kparams))
    ref1 = reference_forward(x1, raw)
    assert out1.shape == (batch, 1), f"bad shape {out1.shape}"
    assert jnp.allclose(out1, ref1, atol=1e-3, rtol=1e-3), "mismatch vs reference (case 1)"

    # Case 2: force a multi-tile grid (exercises the balanced tiling + constant weight specs).
    x2 = jax.random.normal(k_x2, (100, state_dim), jnp.float32)
    out2 = jax.block_until_ready(value_network_forward(x2, kparams, max_tile_b=32))
    ref2 = reference_forward(x2, raw)
    assert out2.shape == (100, 1), f"bad shape {out2.shape}"
    assert jnp.allclose(out2, ref2, atol=1e-3, rtol=1e-3), "mismatch vs reference (case 2)"

    print("KERNEL_OK")
</pallas_src>

<mosaic_0001>
module attributes {stable_mosaic.version = 11 : i64} {
  func.func @value_network_kernel(%arg0: i32, %arg1: memref<16x8xf32, #tpu.memory_space<vmem>>, %arg2: memref<8x128xf32, #tpu.memory_space<vmem>>, %arg3: memref<128x128xbf16, #tpu.memory_space<vmem>>, %arg4: memref<2x128xf32, #tpu.memory_space<vmem>>, %arg5: memref<1x128xf32, #tpu.memory_space<vmem>>, %arg6: memref<1xf32, #tpu.memory_space<smem>>, %arg7: memref<16x1xf32, #tpu.memory_space<vmem>>) attributes {dimension_semantics = [#tpu.dimension_semantics<parallel>], iteration_bounds = array<i64: 1>, scalar_prefetch = 0 : i64, scratch_operands = 0 : i64, tpu.core_type = #tpu.core_type<tc>, window_params = [{transform_indices = @transform_0, window_bounds = array<i64: 16, 8>}, {pipeline_mode = #tpu.pipeline_mode<synchronous>, transform_indices = @transform_1, window_bounds = array<i64: 8, 128>}, {pipeline_mode = #tpu.pipeline_mode<synchronous>, transform_indices = @transform_2, window_bounds = array<i64: 128, 128>}, {pipeline_mode = #tpu.pipeline_mode<synchronous>, transform_indices = @transform_3, window_bounds = array<i64: 2, 128>}, {pipeline_mode = #tpu.pipeline_mode<synchronous>, transform_indices = @transform_4, window_bounds = array<i64: 1, 128>}, {transform_indices = @transform_5, window_bounds = array<i64: 1>}, {transform_indices = @transform_6, window_bounds = array<i64: 16, 1>}]} {
    %c0 = arith.constant 0 : index
    %c0_0 = arith.constant 0 : index
    %0 = vector.load %arg1[%c0, %c0_0] : memref<16x8xf32, #tpu.memory_space<vmem>>, vector<16x8xf32>
    %c0_1 = arith.constant 0 : index
    %c0_2 = arith.constant 0 : index
    %1 = vector.load %arg2[%c0_1, %c0_2] : memref<8x128xf32, #tpu.memory_space<vmem>>, vector<8x128xf32>
    %cst = arith.constant dense<0.000000e+00> : vector<16x128xf32>
    %2 = tpu.matmul %0, %1, %cst {dimension_numbers = #tpu.dot_dimension_numbers<[1], [0], [0], [1], [0, 0, 1, 1], [], []>} : vector<16x8xf32>, vector<8x128xf32>, vector<16x128xf32> -> vector<16x128xf32>
    %c0_3 = arith.constant 0 : index
    %c0_4 = arith.constant 0 : index
    %3 = vector.load %arg4[%c0_3, %c0_4] : memref<2x128xf32, #tpu.memory_space<vmem>>, vector<1x128xf32>
    %4 = vector.broadcast %3 : vector<1x128xf32> to vector<16x128xf32>
    %5 = arith.addf %2, %4 : vector<16x128xf32>
    %cst_5 = arith.constant 0.000000e+00 : f32
    %6 = vector.broadcast %cst_5 : f32 to vector<16x128xf32>
    %7 = arith.maximumf %5, %6 : vector<16x128xf32>
    %8 = arith.truncf %7 : vector<16x128xf32> to vector<16x128xbf16>
    %c0_6 = arith.constant 0 : index
    %c0_7 = arith.constant 0 : index
    %9 = vector.load %arg3[%c0_6, %c0_7] : memref<128x128xbf16, #tpu.memory_space<vmem>>, vector<128x128xbf16>
    %cst_8 = arith.constant dense<0.000000e+00> : vector<16x128xf32>
    %10 = tpu.matmul %8, %9, %cst_8 {dimension_numbers = #tpu.dot_dimension_numbers<[1], [0], [0], [1], [0, 0, 1, 1], [], []>} : vector<16x128xbf16>, vector<128x128xbf16>, vector<16x128xf32> -> vector<16x128xf32>
    %c1 = arith.constant 1 : index
    %c0_9 = arith.constant 0 : index
    %11 = vector.load %arg4[%c1, %c0_9] : memref<2x128xf32, #tpu.memory_space<vmem>>, vector<1x128xf32>
    %12 = vector.broadcast %11 : vector<1x128xf32> to vector<16x128xf32>
    %13 = arith.addf %10, %12 : vector<16x128xf32>
    %cst_10 = arith.constant 0.000000e+00 : f32
    %14 = vector.broadcast %cst_10 : f32 to vector<16x128xf32>
    %15 = arith.maximumf %13, %14 : vector<16x128xf32>
    %c0_11 = arith.constant 0 : index
    %c0_12 = arith.constant 0 : index
    %16 = vector.load %arg5[%c0_11, %c0_12] : memref<1x128xf32, #tpu.memory_space<vmem>>, vector<1x128xf32>
    %17 = vector.broadcast %16 : vector<1x128xf32> to vector<16x128xf32>
    %18 = arith.mulf %15, %17 : vector<16x128xf32>
    %cst_13 = arith.constant dense<0.000000e+00> : vector<16xf32>
    %19 = vector.multi_reduction <add>, %18, %cst_13 [1] : vector<16x128xf32> to vector<16xf32>
    %20 = vector.shape_cast %19 : vector<16xf32> to vector<16x1xf32>
    %c0_14 = arith.constant 0 : index
    %21 = memref.load %arg6[%c0_14] : memref<1xf32, #tpu.memory_space<smem>>
    %22 = vector.broadcast %21 : f32 to vector<16x1xf32>
    %23 = arith.addf %20, %22 : vector<16x1xf32>
    %c0_15 = arith.constant 0 : index
    %c0_16 = arith.constant 0 : index
    %24 = vector.load %arg7[%c0_15, %c0_16] : memref<16x1xf32, #tpu.memory_space<vmem>>, vector<16x1xf32>
    tpu.vector_store %arg7[%c0_15, %c0_16], %23 {strides = array<i32>} : memref<16x1xf32, #tpu.memory_space<vmem>>, vector<16x1xf32>,
    return
  }
  func.func @transform_0(%arg0: i32) -> (i32, i32) {
    %c0_i32 = arith.constant 0 : i32
    %c0_i32_0 = arith.constant 0 : i32
    return %arg0, %c0_i32 : i32, i32
  }
  func.func @transform_1(%arg0: i32) -> (i32, i32) {
    %c0_i32 = arith.constant 0 : i32
    %c0_i32_0 = arith.constant 0 : i32
    %c0_i32_1 = arith.constant 0 : i32
    return %c0_i32, %c0_i32_0 : i32, i32
  }
  func.func @transform_2(%arg0: i32) -> (i32, i32) {
    %c0_i32 = arith.constant 0 : i32
    %c0_i32_0 = arith.constant 0 : i32
    %c0_i32_1 = arith.constant 0 : i32
    return %c0_i32, %c0_i32_0 : i32, i32
  }
  func.func @transform_3(%arg0: i32) -> (i32, i32) {
    %c0_i32 = arith.constant 0 : i32
    %c0_i32_0 = arith.constant 0 : i32
    %c0_i32_1 = arith.constant 0 : i32
    return %c0_i32, %c0_i32_0 : i32, i32
  }
  func.func @transform_4(%arg0: i32) -> (i32, i32) {
    %c0_i32 = arith.constant 0 : i32
    %c0_i32_0 = arith.constant 0 : i32
    %c0_i32_1 = arith.constant 0 : i32
    return %c0_i32, %c0_i32_0 : i32, i32
  }
  func.func @transform_5(%arg0: i32) -> i32 {
    %c0_i32 = arith.constant 0 : i32
    %c0_i32_0 = arith.constant 0 : i32
    return %c0_i32 : i32
  }
  func.func @transform_6(%arg0: i32) -> (i32, i32) {
    %c0_i32 = arith.constant 0 : i32
    %c0_i32_0 = arith.constant 0 : i32
    return %arg0, %c0_i32 : i32, i32
  }
}

</mosaic_0001>

<bundles_post_ra>
// kernel: tpu_custom_call.1
= control target key start
LH: loop header
LB: loop body
LE: loop exit
PB: predicated region body
PF: predicated region fallthrough
CT: control target
= control target key end

     0   :  { %12 = vsyncpa [#allocation4], 0  ;;  %s256_s24 = smov [#allocation3]   ;;  %s257_s26 = smov 64   ;;  %s324_s0 = inlined_call_operand.vmem [shape: f32[16,8], index: 0, kind: input, shape index: {}]   ;;  %s325_s1 = inlined_call_operand.vmem [shape: f32[8,128], index: 1, kind: input, shape index: {}]   ;;  %s326_s2 = inlined_call_operand.hbm [shape: bf16[128,128], index: 2, kind: input, shape index: {}]   ;;  %s327_s3 = inlined_call_operand.vmem [shape: f32[2,128], index: 3, kind: input, shape index: {}]   ;;  %s328_s4 = inlined_call_operand.vmem [shape: f32[1,128], index: 4, kind: input, shape index: {}]   ;;  %s329_s5 = inlined_call_operand.<no memory space> [shape: f32[1], index: 5, kind: input, shape index: {}]   ;;  %s330_s6 = inlined_call_operand.vmem [shape: f32[16,1], index: 6, kind: output, shape index: {}]  }
   0x1   :  { %s21_s23 = sshll.u32 %s326_s2, 4  ;;  %s23_s25 = sshll.u32 %s256_s24, 4  ;;  %s22_s23 = int_to_ptr.hbm [resolvable:$true] %s21_s23  ;;  %s24_s25 = int_to_ptr.vmem [resolvable:$true] %s23_s25 }
   0x2   :  { %s258_s27 = smov 4  }
   0x3   :  { %29 = dma.hbm_to_vmem [thread:$0]  %s22_s23, 1024, %s24_s25, [#allocation4], %s257_s26, %s257_s26, %s258_s27  }
   0x4   :  { %254 = dma.done.wait [#allocation4], 1024  }
   0x5   :  { %255 = vsyncadd [#allocation4], 4294966272  ;;  %vm45_vm0 = vcmask 64512   ;;  %v42_v0 = vld [vmem:[%s325_s1] sm:$0xff]  ;;  %v223_v2 = vld [vmem:[#allocation3 + $0x38] sm:$0xff]  ;;  %v171_v29 = vstv %s329_s5  ;;  %vm174_vm1 = vcmask 7168  }
   0x6   :  { %v40_v1 = vld [vmem:[%s324_s0] sm:$0xff]  ;;  %67 = vmatpush.msra.mxu0 %v42_v0  ;;  %144 = vmatpush.bf16.msra.mxu1 %v223_v2  ;;  %v222_v3 = vld [vmem:[#allocation3 + $0x30] sm:$0xff]  ;;  %v41_v4 = vld [vmem:[%s324_s0 + $0x8] sm:$0xff] }
   0x7   :  { %182 = vmatmul.msk.f32.vlgmr.msra.gmra.mxu0 %vm45_vm0, %v40_v1  ;;  %v221_v5 = vld [vmem:[#allocation3 + $0x28] sm:$0xff]  ;;  %v220_v6 = vld [vmem:[#allocation3 + $0x20] sm:$0xff]  ;;  %v219_v7 = vld [vmem:[#allocation3 + $0x18] sm:$0xff] }
   0x8   :  { %v218_v8 = vld [vmem:[#allocation3 + $0x10] sm:$0xff]  ;;  %v217_v9 = vld [vmem:[#allocation3 + $0x8] sm:$0xff]  ;;  %v216_v10 = vld [vmem:[#allocation3] sm:$0xff] }
   0x9   :  { %v227_v12 = vld [vmem:[%s327_s3] ss:$0 sm:$0xff]  ;;  %v228_v19 = vld [vmem:[%s327_s3 + $0x1] ss:$0 sm:$0xff] }
   0xa   :  { %145 = vmatpush.bf16.msra.mxu1 %v222_v3  ;;  %v229_v22 = vld [vmem:[%s328_s4] ss:$0 sm:$0xff] }
   0xe   :  { %146 = vmatpush.bf16.msra.mxu1 %v221_v5 }
   0xf   :  { %183 = vmatmul.msk.f32.gmra.mxu0 %vm45_vm0, %v41_v4 }
  0x12   :  { %147 = vmatpush.bf16.msra.mxu1 %v220_v6 }
  0x16   :  { %148 = vmatpush.bf16.msra.mxu1 %v219_v7 }
  0x1a   :  { %149 = vmatpush.bf16.msra.mxu1 %v218_v8 }
  0x1e   :  { %150 = vmatpush.bf16.msra.mxu1 %v217_v9 }
  0x22   :  { %151 = vmatpush.bf16.msra.mxu1 %v216_v10 }
  0x84   :  { %v69_v11 = vpop.f32.mrf.mxu0 }
  0x85   :  { %v70_v13 = vadd.f32 %v227_v12, %v69_v11 }
  0x87   :  { %v75_v16 = vmax.f32 %v70_v13, 0.0 }
  0x8c   :  { %v72_v14 = vpop.f32.mrf.mxu0 }
  0x8d   :  { %v73_v15 = vadd.f32 %v227_v12, %v72_v14 }
  0x8f   :  { %v76_v17 = vmax.f32 %v73_v15, 0.0 }
  0x91   :  { %v77_v18 = vpack.c.bf16 %v76_v17, %v75_v16 }
  0x93   :  { %152 = vmatmul.bf16.vlgmr.msra.gmra.mxu1 %v77_v18 }
 0x110   :  { %v153_v20 = vpop.f32.mrf.mxu1 }
 0x111   :  { %v154_v21 = vadd.f32 %v228_v19, %v153_v20 }
 0x113   :  { %v158_v23 = vmax.f32 %v154_v21, 0.0 }
 0x115   :  { %v164_v24 = vmul.f32 %v229_v22, %v158_v23 }
 0x117   :  { %166 = vadd.xlane.f32.xlu0 %v164_v24 }
 0x118   :  { %v155_v25 = vpop.f32.mrf.mxu1 }
 0x119   :  { %v156_v26 = vadd.f32 %v228_v19, %v155_v25 }
 0x11b   :  { %v159_v27 = vmax.f32 %v156_v26, 0.0 }
 0x11d   :  { %v165_v28 = vmul.f32 %v229_v22, %v159_v27 }
 0x11f   :  { %168 = vadd.xlane.f32.xlu0 %v165_v28 }
 0x18a   :  { %v167_v30 = vpop.xlane.xlu0 %166 }
 0x18b   :  { %v172_v31 = vadd.f32 %v171_v29, %v167_v30 }
 0x18d   :  { %175 = vst.msk [vmem:[%s330_s6] sm:$0xff] %vm174_vm1, %v172_v31 }
 0x192   :  { %v169_v32 = vpop.xlane.xlu0 %168 }
 0x193   :  { %v173_v33 = vadd.f32 %v171_v29, %v169_v32 }
 0x195   :  { %176 = vst.msk [vmem:[%s330_s6 + $0x8] sm:$0xff] %vm174_vm1, %v173_v33 }
 0x196   :  { %181 = vsyncpa [#allocation4], 1 }

</bundles_post_ra>
